<compile_context>
chip_gen: v7x
topology: tpu7x:2x2x1
jax: 0.10.0
libtpu: 0.0.40
codegen_flags: <defaults>
</compile_context>

<pallas_src>
import jax
import jax.numpy as jnp
from jax.experimental import pallas as pl
from jax.experimental.pallas import tpu as pltpu


def _round_up(n, m):
    return ((n + m - 1) // m) * m


def mlp_kernel(x_ref, w1_ref, b1_ref, w4_ref, b4_ref, o_ref):
    # out = relu(x @ w1 + b1) @ w4 + b4, fused per batch tile.
    x = x_ref[...]                                   # [TILE_B, 768] (bf16)
    w1 = w1_ref[...]                                 # [768, 16]     (bf16)
    # MXU matmul, f32 accumulation.
    h = jnp.dot(x, w1, preferred_element_type=jnp.float32)   # [TILE_B, 16] f32
    h = h + b1_ref[...]                              # broadcast [1, 16], f32
    h = jnp.maximum(h, 0.0)                          # ReLU (VPU, f32)
    # Second layer is N=1: do it as VPU multiply + XLU reduce, not on the MXU.
    y = jnp.sum(h * w4_ref[...], axis=-1, keepdims=True) + b4_ref[...]  # [TILE_B, 1]
    o_ref[...] = y.astype(o_ref.dtype)


def mlp_forward(x, w1, b1, w4, b4, *, tile_b=2048, use_bf16=True):
    """x: [B, 768] f32; w1: [768, 16]; b1: [16]; w4: [16, 1]; b4: [1]."""
    B, D = x.shape
    H = w1.shape[1]

    # Batch tile: multiple of 8, capped at tile_b, and no bigger than needed.
    tb = min(tile_b, _round_up(B, 8))
    padded_b = _round_up(B, tb)
    if padded_b != B:
        x = jnp.pad(x, ((0, padded_b - B), (0, 0)))

    if use_bf16:
        x_in = x.astype(jnp.bfloat16)
        w1_in = w1.astype(jnp.bfloat16)
    else:
        x_in, w1_in = x, w1

    b1_2d = b1.reshape(1, H).astype(jnp.float32)      # [1, 16]
    w4_row = w4.reshape(1, H).astype(jnp.float32)     # [1, 16] (row form of [16, 1])
    b4_2d = b4.reshape(1, 1).astype(jnp.float32)      # [1, 1]

    grid = (padded_b // tb,)
    out = pl.pallas_call(
        mlp_kernel,
        out_shape=jax.ShapeDtypeStruct((padded_b, 1), jnp.float32),
        grid_spec=pltpu.PrefetchScalarGridSpec(
            num_scalar_prefetch=0,
            grid=grid,
            in_specs=[
                # x streams per batch tile.
                pl.BlockSpec((tb, D), lambda i: (i, 0)),
                # Weights / biases stay resident across the whole grid.
                pl.BlockSpec((D, H), lambda i: (0, 0)),
                pl.BlockSpec((1, H), lambda i: (0, 0)),
                pl.BlockSpec((1, H), lambda i: (0, 0)),
                pl.BlockSpec((1, 1), lambda i: (0, 0)),
            ],
            out_specs=pl.BlockSpec((tb, 1), lambda i: (i, 0)),
        ),
        compiler_params=pltpu.CompilerParams(
            dimension_semantics=("parallel",),
            vmem_limit_bytes=64 << 20,
        ),
    )(x_in, w1_in, b1_2d, w4_row, b4_2d)
    return out[:B]


def init_params(key):
    """Deterministic init matching nn.Linear shapes: fc1 (16,768), fc4 (1,16).
    We store the transposed [in, out] weights directly."""
    k1, k2, k3, k4 = jax.random.split(key, 4)
    bound1 = 1.0 / jnp.sqrt(768.0)
    bound4 = 1.0 / jnp.sqrt(16.0)
    w1 = jax.random.uniform(k1, (768, 16), jnp.float32, -bound1, bound1)
    b1 = jax.random.uniform(k2, (16,), jnp.float32, -bound1, bound1)
    w4 = jax.random.uniform(k3, (16, 1), jnp.float32, -bound4, bound4)
    b4 = jax.random.uniform(k4, (1,), jnp.float32, -bound4, bound4)
    return w1, b1, w4, b4


if __name__ == "__main__":
    key = jax.random.PRNGKey(0)
    kx, kp = jax.random.split(key)
    B = 8
    x = jax.random.normal(kx, (B, 768), jnp.float32)
    w1, b1, w4, b4 = init_params(kp)

    out = mlp_forward(x, w1, b1, w4, b4)
    out = jax.block_until_ready(out)
    assert out.shape == (B, 1)

    # Reference matching the kernel's math exactly (bf16 inputs, f32 accumulate).
    xb = x.astype(jnp.bfloat16).astype(jnp.float32)
    w1b = w1.astype(jnp.bfloat16).astype(jnp.float32)
    ref = jnp.maximum(xb @ w1b + b1, 0.0) @ w4 + b4
    assert jnp.allclose(out, ref, atol=1e-3, rtol=1e-3)

    # Loose check against the pure-f32 module semantics (bf16 stream error only).
    ref_f32 = jnp.maximum(x @ w1 + b1, 0.0) @ w4 + b4
    assert jnp.allclose(out, ref_f32, atol=5e-2, rtol=5e-2)

    print("KERNEL_OK")
</pallas_src>

<mosaic_0001>
module attributes {stable_mosaic.version = 11 : i64} {
  func.func @mlp_kernel(%arg0: i32, %arg1: memref<8x768xbf16, #tpu.memory_space<vmem>>, %arg2: memref<768x16xbf16, #tpu.memory_space<vmem>>, %arg3: memref<1x16xf32, #tpu.memory_space<vmem>>, %arg4: memref<1x16xf32, #tpu.memory_space<vmem>>, %arg5: memref<1x1xf32, #tpu.memory_space<vmem>>, %arg6: memref<8x1xf32, #tpu.memory_space<vmem>>) attributes {dimension_semantics = [#tpu.dimension_semantics<parallel>], iteration_bounds = array<i64: 1>, scalar_prefetch = 0 : i64, scratch_operands = 0 : i64, tpu.core_type = #tpu.core_type<tc>, window_params = [{transform_indices = @transform_0, window_bounds = array<i64: 8, 768>}, {pipeline_mode = #tpu.pipeline_mode<synchronous>, transform_indices = @transform_1, window_bounds = array<i64: 768, 16>}, {pipeline_mode = #tpu.pipeline_mode<synchronous>, transform_indices = @transform_2, window_bounds = array<i64: 1, 16>}, {pipeline_mode = #tpu.pipeline_mode<synchronous>, transform_indices = @transform_3, window_bounds = array<i64: 1, 16>}, {pipeline_mode = #tpu.pipeline_mode<synchronous>, transform_indices = @transform_4, window_bounds = array<i64: 1, 1>}, {transform_indices = @transform_5, window_bounds = array<i64: 8, 1>}]} {
    %c0 = arith.constant 0 : index
    %c0_0 = arith.constant 0 : index
    %0 = vector.load %arg1[%c0, %c0_0] : memref<8x768xbf16, #tpu.memory_space<vmem>>, vector<8x768xbf16>
    %c0_1 = arith.constant 0 : index
    %c0_2 = arith.constant 0 : index
    %1 = vector.load %arg2[%c0_1, %c0_2] : memref<768x16xbf16, #tpu.memory_space<vmem>>, vector<768x16xbf16>
    %cst = arith.constant dense<0.000000e+00> : vector<8x16xf32>
    %2 = tpu.matmul %0, %1, %cst {dimension_numbers = #tpu.dot_dimension_numbers<[1], [0], [0], [1], [0, 0, 1, 1], [], []>} : vector<8x768xbf16>, vector<768x16xbf16>, vector<8x16xf32> -> vector<8x16xf32>
    %c0_3 = arith.constant 0 : index
    %c0_4 = arith.constant 0 : index
    %3 = vector.load %arg3[%c0_3, %c0_4] : memref<1x16xf32, #tpu.memory_space<vmem>>, vector<1x16xf32>
    %4 = vector.broadcast %3 : vector<1x16xf32> to vector<8x16xf32>
    %5 = arith.addf %2, %4 : vector<8x16xf32>
    %cst_5 = arith.constant 0.000000e+00 : f32
    %6 = vector.broadcast %cst_5 : f32 to vector<8x16xf32>
    %7 = arith.maximumf %5, %6 : vector<8x16xf32>
    %c0_6 = arith.constant 0 : index
    %c0_7 = arith.constant 0 : index
    %8 = vector.load %arg4[%c0_6, %c0_7] : memref<1x16xf32, #tpu.memory_space<vmem>>, vector<1x16xf32>
    %9 = vector.broadcast %8 : vector<1x16xf32> to vector<8x16xf32>
    %10 = arith.mulf %7, %9 : vector<8x16xf32>
    %cst_8 = arith.constant dense<0.000000e+00> : vector<8xf32>
    %11 = vector.multi_reduction <add>, %10, %cst_8 [1] : vector<8x16xf32> to vector<8xf32>
    %12 = vector.shape_cast %11 : vector<8xf32> to vector<8x1xf32>
    %c0_9 = arith.constant 0 : index
    %c0_10 = arith.constant 0 : index
    %13 = vector.load %arg5[%c0_9, %c0_10] : memref<1x1xf32, #tpu.memory_space<vmem>>, vector<1x1xf32>
    %14 = vector.broadcast %13 : vector<1x1xf32> to vector<8x1xf32>
    %15 = arith.addf %12, %14 : vector<8x1xf32>
    %c0_11 = arith.constant 0 : index
    %c0_12 = arith.constant 0 : index
    %16 = vector.load %arg6[%c0_11, %c0_12] : memref<8x1xf32, #tpu.memory_space<vmem>>, vector<8x1xf32>
    tpu.vector_store %arg6[%c0_11, %c0_12], %15 {strides = array<i32>} : memref<8x1xf32, #tpu.memory_space<vmem>>, vector<8x1xf32>,
    return
  }
  func.func @transform_0(%arg0: i32) -> (i32, i32) {
    %c0_i32 = arith.constant 0 : i32
    %c0_i32_0 = arith.constant 0 : i32
    return %arg0, %c0_i32 : i32, i32
  }
  func.func @transform_1(%arg0: i32) -> (i32, i32) {
    %c0_i32 = arith.constant 0 : i32
    %c0_i32_0 = arith.constant 0 : i32
    %c0_i32_1 = arith.constant 0 : i32
    return %c0_i32, %c0_i32_0 : i32, i32
  }
  func.func @transform_2(%arg0: i32) -> (i32, i32) {
    %c0_i32 = arith.constant 0 : i32
    %c0_i32_0 = arith.constant 0 : i32
    %c0_i32_1 = arith.constant 0 : i32
    return %c0_i32, %c0_i32_0 : i32, i32
  }
  func.func @transform_3(%arg0: i32) -> (i32, i32) {
    %c0_i32 = arith.constant 0 : i32
    %c0_i32_0 = arith.constant 0 : i32
    %c0_i32_1 = arith.constant 0 : i32
    return %c0_i32, %c0_i32_0 : i32, i32
  }
  func.func @transform_4(%arg0: i32) -> (i32, i32) {
    %c0_i32 = arith.constant 0 : i32
    %c0_i32_0 = arith.constant 0 : i32
    %c0_i32_1 = arith.constant 0 : i32
    return %c0_i32, %c0_i32_0 : i32, i32
  }
  func.func @transform_5(%arg0: i32) -> (i32, i32) {
    %c0_i32 = arith.constant 0 : i32
    %c0_i32_0 = arith.constant 0 : i32
    return %arg0, %c0_i32 : i32, i32
  }
}

</mosaic_0001>

<bundles_post_ra>
// kernel: tpu_custom_call.1
= control target key start
LH: loop header
LB: loop body
LE: loop exit
PB: predicated region body
PF: predicated region fallthrough
CT: control target
= control target key end

     0   :  { %s1050_s0 = inlined_call_operand.hbm [shape: bf16[8,768], index: 0, kind: input, shape index: {}]   ;;  %s1051_s1 = inlined_call_operand.hbm [shape: bf16[768,16], index: 1, kind: input, shape index: {}]   ;;  %s1052_s2 = inlined_call_operand.hbm [shape: f32[1,16], index: 2, kind: input, shape index: {}]   ;;  %s1053_s3 = inlined_call_operand.hbm [shape: f32[1,16], index: 3, kind: input, shape index: {}]   ;;  %s1054_s4 = inlined_call_operand.<no memory space> [shape: f32[1,1], index: 4, kind: input, shape index: {}]   ;;  %s1055_s5 = inlined_call_operand.hbm [shape: f32[8,1], index: 5, kind: output, shape index: {}]  }
   0x1   :  { %v10_v0 = vstv %s1054_s4 }
   0x2   :  { %11 = vst [vmem:[#allocation2] sm:$0x1] %v10_v0 }
   0x3   :  { %12 = vsyncpa [#allocation4], 0 }
   0x4   :  { %13 = vsyncpa [#allocation7], 0 }
   0x5   :  { %14 = vsyncpa [#allocation10], 0 }
   0x6   :  { %15 = vsyncpa [#allocation5], 0  ;;  %s950_s20 = smov [#allocation6]   ;;  %s832_s24 = scalar_lea.hbm %s1051_s1, 6144 }
   0x7   :  { %s31_s21 = sshll.u32 %s950_s20, 4  ;;  %p833_p0 = scmp.ne.s32.totalorder %s1051_s1, %s832_s24  ;;  %s32_s21 = int_to_ptr.vmem [resolvable:$true] %s31_s21 }
   0x8   :  { %p836_p1 = scmp.lt.u32.totalorder %s832_s24, %s1051_s1 }
   0xa   :  { %p838_p2 = pnand %p836_p1, %p833_p0 }
   0xc   :  { %841 = shalt.err (!%p838_p2)
}
   0xd   :  { %s842_s4 = scalar_lea.vmem %s32_s21, 6144  ;;  %p847_p4 = scmp.lt.s32.totalorder %s32_s21, %s32_s21 }
   0xe   :  { %p843_p3 = scmp.ne.s32.totalorder %s32_s21, %s842_s4  ;;  %p848_p5 = scmp.lt.s32.totalorder %s842_s4, %s842_s4 }
  0x10   :  { %p849_p6 = por %p848_p5, %p847_p4 }
  0x12   :  { %p850_p7 = pnand %p849_p6, %p843_p3 }
  0x14   :  { %853 = shalt.err (!%p850_p7)
}
  0x15   :  { %s951_s29 = smov 64   ;;  %s952_s30 = smov 4  }
  0x16   :  { %37 = dma.hbm_to_vmem [thread:$0]  %s1051_s1, 6144, %s32_s21, [#allocation7], %s951_s29, %s951_s29, %s952_s30  }
  0x17   :  { %s953_s8 = smov [#allocation3]   ;;  %s954_s10 = smov [#allocation8]  }
  0x18   :  { %s22_s9 = sshll.u32 %s953_s8, 4  ;;  %s44_s11 = sshll.u32 %s954_s10, 4  ;;  %s23_s9 = int_to_ptr.vmem [resolvable:$true] %s22_s9  ;;  %s45_s11 = int_to_ptr.vmem [resolvable:$true] %s44_s11 }
  0x19   :  { %s854_s14 = scalar_lea.hbm %s1050_s0, 384 }
  0x1a   :  { %p855_p8 = scmp.ne.s32.totalorder %s1050_s0, %s854_s14  ;;  %p858_p9 = scmp.lt.u32.totalorder %s854_s14, %s1050_s0 }
  0x1c   :  { %p860_p10 = pnand %p858_p9, %p855_p8 }
  0x1e   :  { %863 = shalt.err (!%p860_p10)
}
  0x1f   :  { %s864_s1 = scalar_lea.vmem %s23_s9, 384  ;;  %p869_p12 = scmp.lt.s32.totalorder %s23_s9, %s23_s9 }
  0x20   :  { %p865_p11 = scmp.ne.s32.totalorder %s23_s9, %s864_s1  ;;  %p870_p13 = scmp.lt.s32.totalorder %s864_s1, %s864_s1 }
  0x22   :  { %p871_p0 = por %p870_p13, %p869_p12 }
  0x24   :  { %p872_p1 = pnand %p871_p0, %p865_p11 }
  0x26   :  { %875 = shalt.err (!%p872_p1)
}
  0x27   :  { %25 = dma.hbm_to_vmem [thread:$0]  %s1050_s0, 384, %s23_s9, [#allocation4]  }
  0x28   :  { %s876_s23 = scalar_lea.hbm %s1052_s2, 16 }
  0x29   :  { %p877_p2 = scmp.ne.s32.totalorder %s1052_s2, %s876_s23  ;;  %p880_p3 = scmp.lt.u32.totalorder %s876_s23, %s1052_s2 }
  0x2b   :  { %p882_p4 = pnand %p880_p3, %p877_p2 }
  0x2d   :  { %885 = shalt.err (!%p882_p4)
}
  0x2e   :  { %s886_s28 = scalar_lea.vmem %s45_s11, 16  ;;  %s890_s4 = scalar_lea.vmem %s45_s11, 32 }
  0x2f   :  { %p887_p5 = scmp.ne.s32.totalorder %s45_s11, %s886_s28  ;;  %p891_p6 = scmp.lt.s32.totalorder %s45_s11, %s45_s11 }
  0x30   :  { %p892_p7 = scmp.lt.s32.totalorder %s890_s4, %s886_s28 }
  0x32   :  { %p893_p8 = por %p892_p7, %p891_p6 }
  0x34   :  { %p894_p9 = pnand %p893_p8, %p887_p5 }
  0x36   :  { %897 = shalt.err (!%p894_p9)
}
  0x37   :  { %47 = dma.hbm_to_vmem [thread:$0]  %s1052_s2, 16, %s45_s11, [#allocation7]  }
  0x38   :  { %s955_s30 = smov [#allocation9]   ;;  %s898_s9 = scalar_lea.hbm %s1053_s3, 16 }
  0x39   :  { %s54_s6 = sshll.u32 %s955_s30, 4  ;;  %p899_p10 = scmp.ne.s32.totalorder %s1053_s3, %s898_s9  ;;  %s55_s6 = int_to_ptr.vmem [resolvable:$true] %s54_s6 }
  0x3a   :  { %p902_p11 = scmp.lt.u32.totalorder %s898_s9, %s1053_s3 }
  0x3c   :  { %p904_p12 = pnand %p902_p11, %p899_p10 }
  0x3e   :  { %907 = shalt.err (!%p904_p12)
}
  0x3f   :  { %s908_s15 = scalar_lea.vmem %s55_s6, 16  ;;  %s912_s2 = scalar_lea.vmem %s55_s6, 32 }
  0x40   :  { %p909_p13 = scmp.ne.s32.totalorder %s55_s6, %s908_s15  ;;  %p913_p0 = scmp.lt.s32.totalorder %s55_s6, %s55_s6 }
  0x41   :  { %p914_p1 = scmp.lt.s32.totalorder %s912_s2, %s908_s15 }
  0x43   :  { %p915_p2 = por %p914_p1, %p913_p0 }
  0x45   :  { %p916_p3 = pnand %p915_p2, %p909_p13 }
  0x47   :  { %919 = shalt.err (!%p916_p3)
}
  0x48   :  { %57 = dma.hbm_to_vmem [thread:$0]  %s1053_s3, 16, %s55_s6, [#allocation10]  }
  0x49   :  { %942 = dma.done.wait [#allocation4], 384  }
  0x4a   :  { %943 = vsyncadd [#allocation4], 4294966912 }
  0x4b   :  { %944 = dma.done.wait [#allocation7], 6160  }
  0x4c   :  { %945 = vsyncadd [#allocation7], 4294961136 }
  0x4d   :  { %946 = dma.done.wait [#allocation10], 16  }
  0x4e   :  { %947 = vsyncadd [#allocation10], 4294967280  ;;  %v778_v1 = vld [vmem:[#allocation6 + $0x40] sm:$0xff]   ;;  %v782_v5 = vld [vmem:[#allocation6 + $0x48] sm:$0xff]   ;;  %vm617_vm0 = vcmask 130048   ;;  %s956_s3 = smov [#allocation11]  }
  0x4f   :  { %v779_v2 = vld [vmem:[#allocation6] sm:$0xff]   ;;  %705 = vmatprep.subr.bf16.mxu0 %v778_v1  ;;  %v783_v6 = vld [vmem:[#allocation6 + $0x8] sm:$0xff]   ;;  %v786_v9 = vld [vmem:[#allocation6 + $0x50] sm:$0xff]   ;;  %s637_s17 = sshll.u32 %s956_s3, 4  ;;  %vm629_vm1 = vcmask 7168   ;;  %s638_s17 = int_to_ptr.vmem [resolvable:$true] %s637_s17 }
  0x50   :  { %v780_v3 = vld [vmem:[#allocation6 + $0xc0] sm:$0xff]   ;;  %706 = vmatpush3.bf16.msra.mxu0 %v779_v2  ;;  %v784_v7 = vld [vmem:[#allocation6 + $0xc8] sm:$0xff]   ;;  %v787_v10 = vld [vmem:[#allocation6 + $0x10] sm:$0xff]   ;;  %s920_s18 = scalar_lea.vmem %s638_s17, 128  ;;  %p925_p5 = scmp.lt.s32.totalorder %s638_s17, %s638_s17 }
  0x51   :  { %v781_v4 = vld [vmem:[#allocation6 + $0x80] sm:$0xff]   ;;  %727 = vmatprep.subr.bf16.mxu1 %v780_v3  ;;  %707 = vmatprep.subr.bf16.mxu0 %v782_v5  ;;  %v785_v8 = vld [vmem:[#allocation6 + $0x88] sm:$0xff]   ;;  %v788_v11 = vld [vmem:[#allocation6 + $0xd0] sm:$0xff]   ;;  %p921_p4 = scmp.ne.s32.totalorder %s638_s17, %s920_s18  ;;  %p926_p6 = scmp.lt.s32.totalorder %s920_s18, %s920_s18 }
  0x52   :  { %728 = vmatpush3.bf16.msra.mxu1 %v781_v4  ;;  %v789_v12 = vld [vmem:[#allocation6 + $0x90] sm:$0xff]   ;;  %v790_v13 = vld [vmem:[#allocation6 + $0x58] sm:$0xff]   ;;  %v794_v17 = vld [vmem:[#allocation6 + $0x60] sm:$0xff]  }
  0x53   :  { %729 = vmatprep.subr.bf16.mxu1 %v784_v7  ;;  %v791_v14 = vld [vmem:[#allocation6 + $0x18] sm:$0xff]   ;;  %v795_v18 = vld [vmem:[#allocation6 + $0x20] sm:$0xff]   ;;  %v798_v21 = vld [vmem:[#allocation6 + $0x68] sm:$0xff]   ;;  %p927_p7 = por %p926_p6, %p925_p5 }
  0x54   :  { %708 = vmatpush3.bf16.msra.mxu0 %v783_v6  ;;  %v792_v15 = vld [vmem:[#allocation6 + $0xd8] sm:$0xff]   ;;  %v796_v19 = vld [vmem:[#allocation6 + $0xe0] sm:$0xff]   ;;  %v799_v22 = vld [vmem:[#allocation6 + $0x28] sm:$0xff]  }
  0x55   :  { %709 = vmatprep.subr.bf16.mxu0 %v786_v9  ;;  %v793_v16 = vld [vmem:[#allocation6 + $0x98] sm:$0xff]   ;;  %v797_v20 = vld [vmem:[#allocation6 + $0xa0] sm:$0xff]   ;;  %v800_v23 = vld [vmem:[#allocation6 + $0xe8] sm:$0xff]   ;;  %p928_p8 = pnand %p927_p7, %p921_p4 }
  0x56   :  { %730 = vmatpush3.bf16.msra.mxu1 %v785_v8  ;;  %v801_v24 = vld [vmem:[#allocation6 + $0xa8] sm:$0xff]   ;;  %v802_v25 = vld [vmem:[#allocation6 + $0x70] sm:$0xff]   ;;  %v806_v29 = vld [vmem:[#allocation6 + $0x78] sm:$0xff]  }
  0x57   :  { %731 = vmatprep.subr.bf16.mxu1 %v788_v11  ;;  %v803_v26 = vld [vmem:[#allocation6 + $0x30] sm:$0xff]   ;;  %v807_v30 = vld [vmem:[#allocation6 + $0x38] sm:$0xff]   ;;  %v73_v32 = vld [vmem:[#allocation3] sm:$0xff] }
  0x58   :  { %710 = vmatpush3.bf16.msra.mxu0 %v787_v10  ;;  %v804_v27 = vld [vmem:[#allocation6 + $0xf0] sm:$0xff]   ;;  %v808_v31 = vld [vmem:[#allocation6 + $0xf8] sm:$0xff]   ;;  %v649_v33 = vcombine.low %v73_v32, %v73_v32  ;;  %v650_v34 = vcombine.high %v73_v32, %v73_v32  ;;  %v812_v36 = vld [vmem:[#allocation6 + $0x140] sm:$0xff]  }
  0x59   :  { %711 = vmatprep.subr.bf16.mxu0 %v790_v13  ;;  %v805_v28 = vld [vmem:[#allocation6 + $0xb0] sm:$0xff]   ;;  %v811_v35 = vld [vmem:[#allocation6 + $0xb8] sm:$0xff]   ;;  %v815_v40 = vld [vmem:[#allocation6 + $0x100] sm:$0xff]  }
  0x5a   :  { %732 = vmatpush3.bf16.msra.mxu1 %v789_v12  ;;  %v74_v37 = vld [vmem:[#allocation3 + $0x8] sm:$0xff]  ;;  %520 = vmatprep.mubr.bf16.mxu0 %v650_v34  ;;  %v816_v41 = vld [vmem:[#allocation6 + $0x148] sm:$0xff]   ;;  %v820_v45 = vld [vmem:[#allocation6 + $0x158] sm:$0xff]  }
  0x5b   :  { %733 = vmatprep.subr.bf16.mxu1 %v792_v15  ;;  %v651_v38 = vcombine.low %v74_v37, %v74_v37  ;;  %v652_v39 = vcombine.high %v74_v37, %v74_v37  ;;  %v817_v42 = vld [vmem:[#allocation6 + $0x108] sm:$0xff]   ;;  %v818_v43 = vld [vmem:[#allocation6 + $0x150] sm:$0xff]   ;;  %v821_v46 = vld [vmem:[#allocation6 + $0x118] sm:$0xff]  }
  0x5c   :  { %712 = vmatpush3.bf16.msra.mxu0 %v791_v14  ;;  %v819_v44 = vld [vmem:[#allocation6 + $0x110] sm:$0xff]   ;;  %v822_v47 = vld [vmem:[#allocation6 + $0x160] sm:$0xff]   ;;  %v75_v49 = vld [vmem:[#allocation3 + $0x10] sm:$0xff] }
  0x5d   :  { %713 = vmatprep.subr.bf16.mxu0 %v794_v17  ;;  %560 = vmatprep.mubr.bf16.mxu1 %v652_v39  ;;  %v823_v48 = vld [vmem:[#allocation6 + $0x120] sm:$0xff]   ;;  %v824_v50 = vld [vmem:[#allocation6 + $0x168] sm:$0xff]   ;;  %v654_v51 = vcombine.high %v75_v49, %v75_v49  ;;  %v826_v53 = vld [vmem:[#allocation6 + $0x170] sm:$0xff]   ;;  %v653_v57 = vcombine.low %v75_v49, %v75_v49 }
  0x5e   :  { %734 = vmatpush3.bf16.msra.mxu1 %v793_v16  ;;  %v825_v52 = vld [vmem:[#allocation6 + $0x128] sm:$0xff]   ;;  %v827_v54 = vld [vmem:[#allocation6 + $0x130] sm:$0xff]   ;;  %v828_v55 = vld [vmem:[#allocation6 + $0x178] sm:$0xff]  }
  0x5f   :  { %735 = vmatprep.subr.bf16.mxu1 %v796_v19  ;;  %v829_v56 = vld [vmem:[#allocation6 + $0x138] sm:$0xff]   ;;  %v648_v59 = vld [vmem:[#allocation8] ss:$0 sm:$0xff]  ;;  %v703_v13 = vld [vmem:[#allocation9] ss:$0 sm:$0xff] }
  0x60   :  { %714 = vmatpush3.bf16.msra.mxu0 %v795_v18  ;;  %v704_v17 = vld [vmem:[#allocation2] ss:$0 sm:$0xff] }
  0x61   :  { %715 = vmatprep.subr.bf16.mxu0 %v798_v21 }
  0x62   :  { %736 = vmatpush3.bf16.msra.mxu1 %v797_v20 }
  0x63   :  { %737 = vmatprep.subr.bf16.mxu1 %v800_v23 }
  0x64   :  { %716 = vmatpush3.bf16.msra.mxu0 %v799_v22 }
  0x65   :  { %717 = vmatprep.subr.bf16.mxu0 %v802_v25 }
  0x66   :  { %738 = vmatpush3.bf16.msra.mxu1 %v801_v24 }
  0x67   :  { %739 = vmatprep.subr.bf16.mxu1 %v804_v27 }
  0x68   :  { %718 = vmatpush3.bf16.msra.mxu0 %v803_v26 }
  0x69   :  { %719 = vmatprep.subr.bf16.mxu0 %v806_v29 }
  0x6a   :  { %740 = vmatpush3.bf16.msra.mxu1 %v805_v28 }
  0x6b   :  { %741 = vmatprep.subr.bf16.mxu1 %v808_v31 }
  0x6c   :  { %720 = vmatpush3.bf16.msra.mxu0 %v807_v30 }
  0x6d   :  { %749 = vmatprep.subr.bf16.mxu0 %v812_v36 }
  0x6e   :  { %742 = vmatpush3.bf16.msra.mxu1 %v811_v35 }
  0x6f   :  { %521 = vmatmul.mubr.bf16.vlgmr.msra.gmra.mrb[0].mxu0 %v649_v33 }
  0x70   :  { %750 = vmatpush3.bf16.msra.mxu0 %v815_v40  ;;  %600 = vmatprep.mubr.bf16.mxu0 %v654_v51 }
  0x71   :  { %561 = vmatmul.mubr.bf16.vlgmr.msra.gmra.mrb[0].mxu1 %v651_v38  ;;  %751 = vmatprep.subr.bf16.mxu0 %v816_v41 }
  0x74   :  { %752 = vmatpush3.bf16.msra.mxu0 %v817_v42 }
  0x75   :  { %753 = vmatprep.subr.bf16.mxu0 %v818_v43 }
  0x78   :  { %754 = vmatpush3.bf16.msra.mxu0 %v819_v44 }
  0x79   :  { %755 = vmatprep.subr.bf16.mxu0 %v820_v45 }
  0x7c   :  { %756 = vmatpush3.bf16.msra.mxu0 %v821_v46 }
  0x7d   :  { %757 = vmatprep.subr.bf16.mxu0 %v822_v47 }
  0x80   :  { %758 = vmatpush3.bf16.msra.mxu0 %v823_v48 }
  0x81   :  { %759 = vmatprep.subr.bf16.mxu0 %v824_v50 }
  0x84   :  { %760 = vmatpush3.bf16.msra.mxu0 %v825_v52 }
  0x85   :  { %761 = vmatprep.subr.bf16.mxu0 %v826_v53 }
  0x88   :  { %762 = vmatpush3.bf16.msra.mxu0 %v827_v54 }
  0x89   :  { %763 = vmatprep.subr.bf16.mxu0 %v828_v55 }
  0x8c   :  { %764 = vmatpush3.bf16.msra.mxu0 %v829_v56 }
  0x8f   :  { %601 = vmatmul.mubr.bf16.vlgmr.msra.gmra.mrb[4].mxu0 %v653_v57 }
 0x142   :  { %v721_v58 = vpop.f32.mrb[0].mxu0 }
 0x143   :  { %v722_v60 = vpop.f32.mrb[1].mxu0 }
 0x144   :  { %v723_v61 = vadd.f32 %v722_v60, %v721_v58  ;;  %v724_v62 = vpop.f32.mrb[2].mxu0  ;;  %v743_v63 = vpop.f32.mrb[0].mxu1 }
 0x145   :  { %v725_v0 = vpop.f32.mrb[3].mxu0  ;;  %v744_v1 = vpop.f32.mrb[1].mxu1 }
 0x146   :  { %v523_v2 = vadd.f32 %v723_v61, %v648_v59  ;;  %v745_v3 = vadd.f32 %v744_v1, %v743_v63  ;;  %v746_v4 = vpop.f32.mrb[2].mxu1 }
 0x147   :  { %v747_v5 = vpop.f32.mrb[3].mxu1 }
 0x148   :  { %v563_v6 = vadd.f32 %v745_v3, %v523_v2 }
 0x162   :  { %v765_v7 = vpop.f32.mrb[4].mxu0 }
 0x163   :  { %v766_v8 = vpop.f32.mrb[5].mxu0 }
 0x164   :  { %v767_v9 = vadd.f32 %v766_v8, %v765_v7  ;;  %v768_v10 = vpop.f32.mrb[6].mxu0 }
 0x165   :  { %v769_v11 = vpop.f32.mrb[7].mxu0 }
 0x166   :  { %v603_v12 = vadd.f32 %v767_v9, %v563_v6 }
 0x168   :  { %v608_v14 = vmax.f32 %v603_v12, 0.0 }
 0x16a   :  { %v616_v15 = vmul.f32 %v703_v13, %v608_v14 }
 0x16c   :  { %v618_v16 = vsel %vm617_vm0, %v616_v15, 0.0 }
 0x16d   :  { %619 = vadd.xlane.f32.xlu0 %v618_v16 }
 0x1fa   :  { %v620_v18 = vpop.xlane.xlu0 %619 }
 0x1fb   :  { %v628_v19 = vadd.f32 %v704_v17, %v620_v18 }
 0x1fd   :  { %630 = vst.msk [vmem:[#allocation11] sm:$0xff] %vm629_vm1, %v628_v19 }
 0x1fe   :  { %931 = shalt.err (!%p928_p8)
}
 0x1ff   :  { %s932_s20 = scalar_lea.hbm %s1055_s5, 128 }
 0x200   :  { %p933_p9 = scmp.ne.s32.totalorder %s1055_s5, %s932_s20  ;;  %p936_p10 = scmp.lt.u32.totalorder %s932_s20, %s1055_s5 }
 0x202   :  { %p938_p11 = pnand %p936_p10, %p933_p9 }
 0x204   :  { %941 = shalt.err (!%p938_p11)
}
 0x205   :  { %640 = dma.vmem_to_hbm [thread:$0]  %s638_s17, 128, %s1055_s5, [#allocation5]  }
 0x206   :  { %948 = dma.done.wait [#allocation5], 128  }
 0x207   :  { %949 = vsyncadd [#allocation5], 4294967168 }
 0x208   :  { %644 = vsyncpa [#allocation4], 1 }
 0x209   :  { %645 = vsyncpa [#allocation7], 1 }
 0x20a   :  { %646 = vsyncpa [#allocation10], 1 }
 0x20b   :  { %647 = vsyncpa [#allocation5], 1 }

</bundles_post_ra>
